<compile_context>
chip_gen: v6e
topology: v6e:2x2x1
jax: 0.10.0
libtpu: 0.0.40
codegen_flags: <defaults>
</compile_context>

<pallas_src>
import jax
import jax.numpy as jnp
from jax import lax
from jax.experimental import pallas as pl
from jax.experimental.pallas import tpu as pltpu

ALPHA = 0.5
BETA = 0.8            # unused in the forward pass (kept for parity with the module)
CE_RATIO = 0.5
EPS = 1e-10
SMOOTH = 1.0

LANES = 128
MAX_TILE_ROWS = 1024  # (1024,128) f32 block = 512 KiB/input; x2 inputs x2 pipeline
                      # buffers = 2 MiB, far under the scoped-VMEM limit on
                      # v5e/v6e (32 MiB default) and v7x (64 MiB physical).


def _make_kernel(tile_rows, rem_rows, n_elems, lane_pad, num_tiles):
    """Build the kernel with all shape-derived quantities baked in as constants."""
    needs_mask = rem_rows != tile_rows   # only true when rows % tile_rows != 0
    n_f = float(n_elems)

    def kernel(x_ref, t_ref, out_ref, acc_ref):
        i = pl.program_id(0)

        @pl.when(i == 0)
        def _init():
            acc_ref[...] = jnp.zeros_like(acc_ref)

        def accumulate(row_mask):
            x = x_ref[...].astype(jnp.float32)
            t = t_ref[...].astype(jnp.float32)
            if row_mask is not None:
                # Edge block only: rows past the array end hold unspecified
                # data in the VMEM buffer; zero them before any arithmetic.
                x = jnp.where(row_mask, x, 0.0)
                t = jnp.where(row_mask, t, 0.0)

            # Weighted cross-entropy term (mirrors the PyTorch expression).
            xc = jnp.clip(x, EPS, 1.0 - EPS)
            ce = -(ALPHA * (t * jnp.log(xc)
                            + (1.0 - ALPHA) * (1.0 - t) * jnp.log(1.0 - xc)))
            if row_mask is not None:
                ce = jnp.where(row_mask, ce, 0.0)

            # Per-lane partial sums into the merged accumulator scratch.
            acc_ref[0:1, :] += jnp.sum(x * t, axis=0, keepdims=True)   # intersection
            acc_ref[1:2, :] += jnp.sum(x, axis=0, keepdims=True)       # sum(inputs)
            acc_ref[2:3, :] += jnp.sum(t, axis=0, keepdims=True)       # sum(targets)
            acc_ref[3:4, :] += jnp.sum(ce, axis=0, keepdims=True)      # sum(CE)

        if needs_mask:
            @pl.when(i < num_tiles - 1)
            def _bulk():
                accumulate(None)                      # unmasked fast path

            @pl.when(i == num_tiles - 1)
            def _edge():
                row = lax.broadcasted_iota(jnp.int32, (tile_rows, LANES), 0)
                accumulate(row < rem_rows)            # masked ragged edge block
        else:
            accumulate(None)

        @pl.when(i == num_tiles - 1)
        def _finalize():
            intersection = jnp.sum(acc_ref[0:1, :])
            denom = jnp.sum(acc_ref[1:2, :]) + jnp.sum(acc_ref[2:3, :]) + SMOOTH
            dice = (2.0 * intersection + SMOOTH) / denom

            ce_sum = jnp.sum(acc_ref[3:4, :])
            if lane_pad:
                # Analytic correction for zero-padded lane-tail elements
                # (x = t = 0).  In f32 this folds to 0 at compile time, but it
                # keeps the result bit-faithful to the un-padded reference.
                zero_xc = jnp.clip(jnp.float32(0.0), EPS, 1.0 - EPS)
                ce_zero = -(ALPHA * (1.0 - ALPHA) * jnp.log(1.0 - zero_xc))
                ce_sum = ce_sum - jnp.float32(lane_pad) * ce_zero

            weighted_ce = ce_sum / n_f
            combo = CE_RATIO * weighted_ce - (1.0 - CE_RATIO) * dice
            out_ref[...] = combo * jnp.ones((1, 1), jnp.float32)

    return kernel


def combo_loss(inputs, targets):
    """Pallas ComboLoss forward. Accepts arrays of any (matching) shape."""
    assert inputs.shape == targets.shape
    n = int(inputs.size)

    x = inputs.reshape(-1)
    t = targets.reshape(-1)

    # Present the data as (rows, 128) with the lane axis last.  A zero-pad
    # copy is only needed for a lane-ragged tail (n % 128 != 0); common
    # segmentation shapes are 128-divisible and incur no host copy.
    lane_pad = (-n) % LANES
    if lane_pad:
        x = jnp.pad(x, (0, lane_pad))
        t = jnp.pad(t, (0, lane_pad))
    rows = (n + lane_pad) // LANES
    x = x.reshape(rows, LANES)
    t = t.reshape(rows, LANES)

    # Large row-blocks: full extent when small, else MAX_TILE_ROWS (mult of 8).
    tile_rows = rows if rows <= MAX_TILE_ROWS else MAX_TILE_ROWS
    num_tiles = pl.cdiv(rows, tile_rows)
    rem_rows = rows - (num_tiles - 1) * tile_rows   # valid rows in the last block

    kernel = _make_kernel(tile_rows, rem_rows, n, lane_pad, num_tiles)

    out = pl.pallas_call(
        kernel,
        out_shape=jax.ShapeDtypeStruct((1, 1), jnp.float32),
        grid_spec=pltpu.PrefetchScalarGridSpec(
            num_scalar_prefetch=0,
            grid=(num_tiles,),
            in_specs=[
                pl.BlockSpec((tile_rows, LANES), lambda i: (i, 0)),
                pl.BlockSpec((tile_rows, LANES), lambda i: (i, 0)),
            ],
            out_specs=pl.BlockSpec((1, 1), lambda i: (0, 0)),
            scratch_shapes=[pltpu.VMEM((8, LANES), jnp.float32)],
        ),
        compiler_params=pltpu.CompilerParams(
            dimension_semantics=("arbitrary",)),
    )(x, t)
    return out[0, 0]


def combo_loss_ref(inputs, targets, smooth=SMOOTH):
    """Pure-JAX reference matching the PyTorch forward exactly."""
    x = inputs.reshape(-1).astype(jnp.float32)
    t = targets.reshape(-1).astype(jnp.float32)
    intersection = jnp.sum(x * t)
    dice = (2.0 * intersection + smooth) / (jnp.sum(x) + jnp.sum(t) + smooth)
    xc = jnp.clip(x, EPS, 1.0 - EPS)
    out = -(ALPHA * (t * jnp.log(xc)
                     + (1.0 - ALPHA) * (1.0 - t) * jnp.log(1.0 - xc)))
    weighted_ce = jnp.mean(out)
    return CE_RATIO * weighted_ce - (1.0 - CE_RATIO) * dice


if __name__ == "__main__":
    key = jax.random.PRNGKey(0)
    k_in, k_tg = jax.random.split(key)

    # Small shapes consistent with a segmentation-style loss input (NCHW).
    shape = (2, 4, 16, 16)
    inputs = jax.nn.sigmoid(jax.random.normal(k_in, shape, dtype=jnp.float32))
    targets = jax.random.bernoulli(k_tg, 0.5, shape).astype(jnp.float32)

    loss = jax.block_until_ready(combo_loss(inputs, targets))
    ref = jax.block_until_ready(combo_loss_ref(inputs, targets))

    assert jnp.isfinite(loss), "kernel produced non-finite loss"
    assert abs(float(loss) - float(ref)) < 1e-5, (float(loss), float(ref))
    print("KERNEL_OK")
</pallas_src>

<mosaic_0001>
module attributes {stable_mosaic.version = 11 : i64} {
  func.func @kernel(%arg0: i32, %arg1: memref<16x128xf32, #tpu.memory_space<vmem>>, %arg2: memref<16x128xf32, #tpu.memory_space<vmem>>, %arg3: memref<1x1xf32, #tpu.memory_space<vmem>>, %arg4: memref<8x128xf32, #tpu.memory_space<vmem>>) attributes {dimension_semantics = [#tpu.dimension_semantics<arbitrary>], iteration_bounds = array<i64: 1>, scalar_prefetch = 0 : i64, scratch_operands = 1 : i64, tpu.core_type = #tpu.core_type<tc>, window_params = [{transform_indices = @transform_0, window_bounds = array<i64: 16, 128>}, {transform_indices = @transform_1, window_bounds = array<i64: 16, 128>}, {pipeline_mode = #tpu.pipeline_mode<synchronous>, transform_indices = @transform_2, window_bounds = array<i64: 1, 1>}]} {
    %c0_i32 = arith.constant 0 : i32
    %0 = arith.cmpi eq, %arg0, %c0_i32 : i32
    %1 = arith.extui %0 : i1 to i32
    %c0_i32_0 = arith.constant 0 : i32
    %2 = arith.cmpi ne, %1, %c0_i32_0 : i32
    scf.if %2 {
      %cst_29 = arith.constant 0.000000e+00 : f32
      %48 = vector.broadcast %cst_29 : f32 to vector<8x128xf32>
      %c0_30 = arith.constant 0 : index
      %c0_31 = arith.constant 0 : index
      %49 = vector.load %arg4[%c0_30, %c0_31] : memref<8x128xf32, #tpu.memory_space<vmem>>, vector<8x128xf32>
      tpu.vector_store %arg4[%c0_30, %c0_31], %48 {strides = array<i32>} : memref<8x128xf32, #tpu.memory_space<vmem>>, vector<8x128xf32>,
    } else {
    }
    %c0 = arith.constant 0 : index
    %c0_1 = arith.constant 0 : index
    %3 = vector.load %arg1[%c0, %c0_1] : memref<16x128xf32, #tpu.memory_space<vmem>>, vector<16x128xf32>
    %c0_2 = arith.constant 0 : index
    %c0_3 = arith.constant 0 : index
    %4 = vector.load %arg2[%c0_2, %c0_3] : memref<16x128xf32, #tpu.memory_space<vmem>>, vector<16x128xf32>
    %cst = arith.constant 1.000000e-10 : f32
    %cst_4 = arith.constant 1.000000e+00 : f32
    %5 = vector.broadcast %cst : f32 to vector<16x128xf32>
    %6 = arith.maximumf %5, %3 : vector<16x128xf32>
    %7 = vector.broadcast %cst_4 : f32 to vector<16x128xf32>
    %8 = arith.minimumf %7, %6 : vector<16x128xf32>
    %9 = math.log %8 : vector<16x128xf32>
    %10 = arith.mulf %4, %9 : vector<16x128xf32>
    %cst_5 = arith.constant 1.000000e+00 : f32
    %11 = vector.broadcast %cst_5 : f32 to vector<16x128xf32>
    %12 = arith.subf %11, %4 : vector<16x128xf32>
    %cst_6 = arith.constant 5.000000e-01 : f32
    %13 = vector.broadcast %cst_6 : f32 to vector<16x128xf32>
    %14 = arith.mulf %13, %12 : vector<16x128xf32>
    %cst_7 = arith.constant 1.000000e+00 : f32
    %15 = vector.broadcast %cst_7 : f32 to vector<16x128xf32>
    %16 = arith.subf %15, %8 : vector<16x128xf32>
    %17 = math.log %16 : vector<16x128xf32>
    %18 = arith.mulf %14, %17 : vector<16x128xf32>
    %19 = arith.addf %10, %18 : vector<16x128xf32>
    %cst_8 = arith.constant 5.000000e-01 : f32
    %20 = vector.broadcast %cst_8 : f32 to vector<16x128xf32>
    %21 = arith.mulf %20, %19 : vector<16x128xf32>
    %cst_9 = arith.constant 0.000000e+00 : f32
    %22 = vector.broadcast %cst_9 : f32 to vector<16x128xf32>
    %23 = arith.subf %22, %21 : vector<16x128xf32>
    %c0_10 = arith.constant 0 : index
    %c0_11 = arith.constant 0 : index
    %24 = vector.load %arg4[%c0_10, %c0_11] : memref<8x128xf32, #tpu.memory_space<vmem>>, vector<1x128xf32>
    %25 = arith.mulf %3, %4 : vector<16x128xf32>
    %cst_12 = arith.constant dense<0.000000e+00> : vector<128xf32>
    %26 = vector.multi_reduction <add>, %25, %cst_12 [0] : vector<16x128xf32> to vector<128xf32>
    %27 = vector.shape_cast %26 : vector<128xf32> to vector<1x128xf32>
    %28 = arith.addf %24, %27 : vector<1x128xf32>
    %c0_13 = arith.constant 0 : index
    %c0_14 = arith.constant 0 : index
    %29 = vector.load %arg4[%c0_13, %c0_14] : memref<8x128xf32, #tpu.memory_space<vmem>>, vector<1x128xf32>
    tpu.vector_store %arg4[%c0_13, %c0_14], %28 {strides = array<i32>} : memref<8x128xf32, #tpu.memory_space<vmem>>, vector<1x128xf32>,
    %c1 = arith.constant 1 : index
    %c0_15 = arith.constant 0 : index
    %30 = vector.load %arg4[%c1, %c0_15] : memref<8x128xf32, #tpu.memory_space<vmem>>, vector<1x128xf32>
    %cst_16 = arith.constant dense<0.000000e+00> : vector<128xf32>
    %31 = vector.multi_reduction <add>, %3, %cst_16 [0] : vector<16x128xf32> to vector<128xf32>
    %32 = vector.shape_cast %31 : vector<128xf32> to vector<1x128xf32>
    %33 = arith.addf %30, %32 : vector<1x128xf32>
    %c1_17 = arith.constant 1 : index
    %c0_18 = arith.constant 0 : index
    %34 = vector.load %arg4[%c1_17, %c0_18] : memref<8x128xf32, #tpu.memory_space<vmem>>, vector<1x128xf32>
    tpu.vector_store %arg4[%c1_17, %c0_18], %33 {strides = array<i32>} : memref<8x128xf32, #tpu.memory_space<vmem>>, vector<1x128xf32>,
    %c2 = arith.constant 2 : index
    %c0_19 = arith.constant 0 : index
    %35 = vector.load %arg4[%c2, %c0_19] : memref<8x128xf32, #tpu.memory_space<vmem>>, vector<1x128xf32>
    %cst_20 = arith.constant dense<0.000000e+00> : vector<128xf32>
    %36 = vector.multi_reduction <add>, %4, %cst_20 [0] : vector<16x128xf32> to vector<128xf32>
    %37 = vector.shape_cast %36 : vector<128xf32> to vector<1x128xf32>
    %38 = arith.addf %35, %37 : vector<1x128xf32>
    %c2_21 = arith.constant 2 : index
    %c0_22 = arith.constant 0 : index
    %39 = vector.load %arg4[%c2_21, %c0_22] : memref<8x128xf32, #tpu.memory_space<vmem>>, vector<1x128xf32>
    tpu.vector_store %arg4[%c2_21, %c0_22], %38 {strides = array<i32>} : memref<8x128xf32, #tpu.memory_space<vmem>>, vector<1x128xf32>,
    %c3 = arith.constant 3 : index
    %c0_23 = arith.constant 0 : index
    %40 = vector.load %arg4[%c3, %c0_23] : memref<8x128xf32, #tpu.memory_space<vmem>>, vector<1x128xf32>
    %cst_24 = arith.constant dense<0.000000e+00> : vector<128xf32>
    %41 = vector.multi_reduction <add>, %23, %cst_24 [0] : vector<16x128xf32> to vector<128xf32>
    %42 = vector.shape_cast %41 : vector<128xf32> to vector<1x128xf32>
    %43 = arith.addf %40, %42 : vector<1x128xf32>
    %c3_25 = arith.constant 3 : index
    %c0_26 = arith.constant 0 : index
    %44 = vector.load %arg4[%c3_25, %c0_26] : memref<8x128xf32, #tpu.memory_space<vmem>>, vector<1x128xf32>
    tpu.vector_store %arg4[%c3_25, %c0_26], %43 {strides = array<i32>} : memref<8x128xf32, #tpu.memory_space<vmem>>, vector<1x128xf32>,
    %c0_i32_27 = arith.constant 0 : i32
    %45 = arith.cmpi eq, %arg0, %c0_i32_27 : i32
    %46 = arith.extui %45 : i1 to i32
    %c0_i32_28 = arith.constant 0 : i32
    %47 = arith.cmpi ne, %46, %c0_i32_28 : i32
    scf.if %47 {
      %c0_29 = arith.constant 0 : index
      %c0_30 = arith.constant 0 : index
      %48 = vector.load %arg4[%c0_29, %c0_30] : memref<8x128xf32, #tpu.memory_space<vmem>>, vector<1x128xf32>
      %49 = vector.shape_cast %48 : vector<1x128xf32> to vector<1x1x128xf32>
      %cst_31 = arith.constant dense<0.000000e+00> : vector<1xf32>
      %50 = vector.multi_reduction <add>, %49, %cst_31 [1, 2] : vector<1x1x128xf32> to vector<1xf32>
      %51 = vector.shape_cast %50 : vector<1xf32> to vector<1x1x1xf32>
      %52 = vector.extract %51[0, 0, 0] : f32 from vector<1x1x1xf32>
      %c1_32 = arith.constant 1 : index
      %c0_33 = arith.constant 0 : index
      %53 = vector.load %arg4[%c1_32, %c0_33] : memref<8x128xf32, #tpu.memory_space<vmem>>, vector<1x128xf32>
      %54 = vector.shape_cast %53 : vector<1x128xf32> to vector<1x1x128xf32>
      %cst_34 = arith.constant dense<0.000000e+00> : vector<1xf32>
      %55 = vector.multi_reduction <add>, %54, %cst_34 [1, 2] : vector<1x1x128xf32> to vector<1xf32>
      %56 = vector.shape_cast %55 : vector<1xf32> to vector<1x1x1xf32>
      %57 = vector.extract %56[0, 0, 0] : f32 from vector<1x1x1xf32>
      %c2_35 = arith.constant 2 : index
      %c0_36 = arith.constant 0 : index
      %58 = vector.load %arg4[%c2_35, %c0_36] : memref<8x128xf32, #tpu.memory_space<vmem>>, vector<1x128xf32>
      %59 = vector.shape_cast %58 : vector<1x128xf32> to vector<1x1x128xf32>
      %cst_37 = arith.constant dense<0.000000e+00> : vector<1xf32>
      %60 = vector.multi_reduction <add>, %59, %cst_37 [1, 2] : vector<1x1x128xf32> to vector<1xf32>
      %61 = vector.shape_cast %60 : vector<1xf32> to vector<1x1x1xf32>
      %62 = vector.extract %61[0, 0, 0] : f32 from vector<1x1x1xf32>
      %63 = arith.addf %57, %62 : f32
      %cst_38 = arith.constant 1.000000e+00 : f32
      %64 = arith.addf %63, %cst_38 : f32
      %cst_39 = arith.constant 2.000000e+00 : f32
      %65 = arith.mulf %cst_39, %52 : f32
      %cst_40 = arith.constant 1.000000e+00 : f32
      %66 = arith.addf %65, %cst_40 : f32
      %67 = arith.divf %66, %64 : f32
      %c3_41 = arith.constant 3 : index
      %c0_42 = arith.constant 0 : index
      %68 = vector.load %arg4[%c3_41, %c0_42] : memref<8x128xf32, #tpu.memory_space<vmem>>, vector<1x128xf32>
      %69 = vector.shape_cast %68 : vector<1x128xf32> to vector<1x1x128xf32>
      %cst_43 = arith.constant dense<0.000000e+00> : vector<1xf32>
      %70 = vector.multi_reduction <add>, %69, %cst_43 [1, 2] : vector<1x1x128xf32> to vector<1xf32>
      %71 = vector.shape_cast %70 : vector<1xf32> to vector<1x1x1xf32>
      %72 = vector.extract %71[0, 0, 0] : f32 from vector<1x1x1xf32>
      %cst_44 = arith.constant 2.048000e+03 : f32
      %73 = arith.divf %72, %cst_44 : f32
      %cst_45 = arith.constant 5.000000e-01 : f32
      %74 = arith.mulf %cst_45, %73 : f32
      %cst_46 = arith.constant 5.000000e-01 : f32
      %75 = arith.mulf %cst_46, %67 : f32
      %76 = arith.subf %74, %75 : f32
      %cst_47 = arith.constant 1.000000e+00 : f32
      %77 = vector.broadcast %cst_47 : f32 to vector<1x1xf32>
      %78 = vector.broadcast %76 : f32 to vector<1x1xf32>
      %79 = arith.mulf %78, %77 : vector<1x1xf32>
      %c0_48 = arith.constant 0 : index
      %c0_49 = arith.constant 0 : index
      %80 = vector.load %arg3[%c0_48, %c0_49] : memref<1x1xf32, #tpu.memory_space<vmem>>, vector<1x1xf32>
      tpu.vector_store %arg3[%c0_48, %c0_49], %79 {strides = array<i32>} : memref<1x1xf32, #tpu.memory_space<vmem>>, vector<1x1xf32>,
    } else {
    }
    return
  }
  func.func @transform_0(%arg0: i32) -> (i32, i32) {
    %c0_i32 = arith.constant 0 : i32
    %c0_i32_0 = arith.constant 0 : i32
    return %arg0, %c0_i32 : i32, i32
  }
  func.func @transform_1(%arg0: i32) -> (i32, i32) {
    %c0_i32 = arith.constant 0 : i32
    %c0_i32_0 = arith.constant 0 : i32
    return %arg0, %c0_i32 : i32, i32
  }
  func.func @transform_2(%arg0: i32) -> (i32, i32) {
    %c0_i32 = arith.constant 0 : i32
    %c0_i32_0 = arith.constant 0 : i32
    %c0_i32_1 = arith.constant 0 : i32
    return %c0_i32, %c0_i32_0 : i32, i32
  }
}

</mosaic_0001>

<bundles_post_ra>
// kernel: tpu_custom_call.1
= control target key start
LH: loop header
LB: loop body
LE: loop exit
PB: predicated region body
PF: predicated region fallthrough
CT: control target
= control target key end

     0   :  { %7 = vsyncpa [#allocation4], 0  ;;  %s326_s0 = inlined_call_operand.hbm [shape: f32[16,128], index: 0, kind: input, shape index: {}]   ;;  %s327_s1 = inlined_call_operand.hbm [shape: f32[16,128], index: 1, kind: input, shape index: {}]   ;;  %s328_s2 = inlined_call_operand.hbm [shape: f32[1,1], index: 2, kind: output, shape index: {}]  }
   0x1   :  { %8 = vsyncpa [#allocation7], 0 }
   0x2   :  { %9 = vsyncpa [#allocation5], 0  ;;  %s292_s9 = smov [#allocation3]  }
   0x3   :  { %s15_s10 = sshll.u32 %s292_s9, 4  ;;  %s16_s10 = int_to_ptr.vmem [resolvable:$true] %s15_s10 }
   0x4   :  { %s234_s11 = scalar_lea.vmem %s16_s10, 256  ;;  %p239_p1 = scmp.lt.s32.totalorder %s16_s10, %s16_s10 }
   0x5   :  { %p235_p0 = scmp.ne.s32.totalorder %s16_s10, %s234_s11  ;;  %p240_p2 = scmp.lt.s32.totalorder %s234_s11, %s234_s11 }
   0x7   :  { %p241_p3 = por %p240_p2, %p239_p1 }
   0x9   :  { %p242_p4 = pnand %p241_p3, %p235_p0 }
   0xb   :  { %245 = shalt.err (!%p242_p4)
}
   0xc   :  { %s293_s12 = smov 128   ;;  %s294_s13 = smov 8  }
   0xd   :  { %21 = dma.hbm_to_vmem [thread:$0]  %s326_s0, 256, %s16_s10, [#allocation4], %s293_s12, %s293_s12, %s294_s13  }
   0xe   :  { %s295_s16 = smov [#allocation6]  }
   0xf   :  { %s27_s17 = sshll.u32 %s295_s16, 4  ;;  %s28_s17 = int_to_ptr.vmem [resolvable:$true] %s27_s17 }
  0x10   :  { %s254_s18 = scalar_lea.vmem %s28_s17, 256  ;;  %p259_p6 = scmp.lt.s32.totalorder %s28_s17, %s28_s17 }
  0x11   :  { %p255_p5 = scmp.ne.s32.totalorder %s28_s17, %s254_s18  ;;  %p260_p7 = scmp.lt.s32.totalorder %s254_s18, %s254_s18 }
  0x13   :  { %p261_p8 = por %p260_p7, %p259_p6 }
  0x15   :  { %p262_p9 = pnand %p261_p8, %p255_p5 }
  0x17   :  { %265 = shalt.err (!%p262_p9)
}
  0x18   :  { %33 = dma.hbm_to_vmem [thread:$0]  %s327_s1, 256, %s28_s17, [#allocation7], %s293_s12, %s293_s12, %s294_s13  }
  0x19   :  { %286 = dma.done.wait [#allocation4], 256  }
  0x1a   :  { %287 = vsyncadd [#allocation4], 4294967040 }
  0x1b   :  { %288 = dma.done.wait [#allocation7], 256  }
  0x1c   :  { %289 = vsyncadd [#allocation7], 4294967040  ;;  %v296_v0 = vmov 0.0   ;;  %v47_v1 = vld [vmem:[#allocation6] sm:$0xff]  ;;  %v48_v2 = vld [vmem:[#allocation6 + $0x8] sm:$0xff]  ;;  %vm123_vm0 = vcmask 1040384  }
  0x1d   :  { %44 = vst [vmem:[#allocation2] sm:$0xff] %v296_v0  ;;  %v45_v3 = vld [vmem:[#allocation3] sm:$0xff]  ;;  %v100_v4 = vadd.f32 %v48_v2, %v47_v1  ;;  %v46_v5 = vld [vmem:[#allocation3 + $0x8] sm:$0xff]  ;;  %v59_v37 = vsub.f32 1.0, %v47_v1  ;;  %v60_v39 = vsub.f32 1.0, %v48_v2  ;;  %s297_s4 = smov [#allocation8]  }
  0x1e   :  { %v78_v6 = vmul.f32 %v47_v1, %v45_v3  ;;  %v49_v7 = vmax.f32 %v45_v3, 1e-10  ;;  %v50_v8 = vmax.f32 %v46_v5, 1e-10  ;;  %v79_v9 = vmul.f32 %v48_v2, %v46_v5  ;;  %s190_s5 = sshll.u32 %s297_s4, 4  ;;  %s191_s5 = int_to_ptr.vmem [resolvable:$true] %s190_s5 }
  0x1f   :  { %v90_v10 = vadd.f32 %v46_v5, %v45_v3  ;;  %v101_v11 = vrot.slane %v100_v4, 4  ;;  %v61_v45 = vmul.f32 0.5, %v59_v37  ;;  %v62_v48 = vmul.f32 0.5, %v60_v39  ;;  %s266_s7 = scalar_lea.vmem %s191_s5, 16  ;;  %s270_s8 = scalar_lea.vmem %s191_s5, 32 }
  0x20   :  { %v51_v12 = vmin.f32 %v49_v7, 1.0  ;;  %v52_v13 = vmin.f32 %v50_v8, 1.0  ;;  %v80_v14 = vadd.f32 %v79_v9, %v78_v6  ;;  %vm182_vm1 = vcmask 0   ;;  %p267_p10 = scmp.ne.s32.totalorder %s191_s5, %s266_s7  ;;  %p271_p11 = scmp.lt.s32.totalorder %s191_s5, %s191_s5 }
  0x21   :  { %v91_v15 = vrot.slane %v90_v10, 4  ;;  %v102_v16 = vadd.f32 %v101_v11, %v100_v4  ;;  %p272_p12 = scmp.lt.s32.totalorder %s270_s8, %s266_s7 }
  0x22   :  { %216 = vlog2.f32 %v51_v12  ;;  %v63_v17 = vsub.f32 1.0, %v51_v12  ;;  %v64_v18 = vsub.f32 1.0, %v52_v13  ;;  %v81_v19 = vrot.slane %v80_v14, 4 }
  0x23   :  { %v103_v20 = vrot.slane %v102_v16, 2  ;;  %218 = vlog2.f32 %v52_v13  ;;  %v92_v21 = vadd.f32 %v91_v15, %v90_v10  ;;  %p273_p13 = por %p272_p12, %p271_p11 }
  0x24   :  { %220 = vlog2.f32 %v63_v17  ;;  %v82_v22 = vadd.f32 %v81_v19, %v80_v14  ;;  %v99_v28 = vld [vmem:[#allocation2 + $0x2] sm:$0x1]  ;;  %v89_v33 = vld [vmem:[#allocation2 + $0x1] sm:$0x1]  ;;  %v77_v35 = vld [vmem:[#allocation2] sm:$0x1] }
  0x25   :  { %v104_v23 = vadd.f32 %v103_v20, %v102_v16  ;;  %222 = vlog2.f32 %v64_v18  ;;  %v93_v24 = vrot.slane %v92_v21, 2  ;;  %v109_v10 = vld [vmem:[#allocation2 + $0x3] sm:$0x1]  ;;  %p274_p0 = pnand %p273_p13, %p267_p10 }
  0x26   :  { %v83_v25 = vrot.slane %v82_v22, 2 }
  0x27   :  { %v105_v26 = vrot.slane %v104_v23, 1  ;;  %v94_v27 = vadd.f32 %v93_v24, %v92_v21 }
  0x28   :  { %v84_v29 = vadd.f32 %v83_v25, %v82_v22 }
  0x29   :  { %v106_v30 = vadd.f32 %v105_v26, %v104_v23  ;;  %v95_v31 = vrot.slane %v94_v27, 1 }
  0x2a   :  { %v85_v32 = vrot.slane %v84_v29, 1 }
  0x2b   :  { %v107_v34 = vadd.f32 %v106_v30, %v99_v28  ;;  %v96_v36 = vadd.f32 %v95_v31, %v94_v27 }
  0x2c   :  { %v86_v38 = vadd.f32 %v85_v32, %v84_v29 }
  0x2d   :  { %108 = vst [vmem:[#allocation2 + $0x2] sm:$0x1] %v107_v34  ;;  %v97_v40 = vadd.f32 %v96_v36, %v89_v33 }
  0x2e   :  { %v87_v41 = vadd.f32 %v86_v38, %v77_v35 }
  0x2f   :  { %v217_v42 = vpop.eup %216  ;;  %98 = vst [vmem:[#allocation2 + $0x1] sm:$0x1] %v97_v40 }
  0x30   :  { %v219_v43 = vpop.eup %218  ;;  %88 = vst [vmem:[#allocation2] sm:$0x1] %v87_v41  ;;  %v54_v44 = vmul.f32 0.6931472, %v217_v42 }
  0x31   :  { %v221_v46 = vpop.eup %220  ;;  %v56_v47 = vmul.f32 0.6931472, %v219_v43 }
  0x32   :  { %v223_v49 = vpop.eup %222  ;;  %v57_v50 = vmul.f32 %v54_v44, %v47_v1  ;;  %v66_v51 = vmul.f32 0.6931472, %v221_v46 }
  0x33   :  { %v58_v52 = vmul.f32 %v56_v47, %v48_v2  ;;  %v68_v53 = vmul.f32 0.6931472, %v223_v49 }
  0x34   :  { %v145_v54 = vld [vmem:[#allocation2 + $0x2] sm:$0x1]  ;;  %v69_v55 = vmul.f32 %v66_v51, %v61_v45 }
  0x35   :  { %v146_v56 = vsel %vm123_vm0, %v145_v54, 0.0  ;;  %v70_v57 = vmul.f32 %v68_v53, %v62_v48 }
  0x36   :  { %147 = vadd.xlane.f32.xlu1 %v146_v56  ;;  %v71_v58 = vadd.f32 %v69_v55, %v57_v50  ;;  %v134_v60 = vld [vmem:[#allocation2 + $0x1] sm:$0x1] }
  0x37   :  { %v122_v59 = vld [vmem:[#allocation2] sm:$0x1]  ;;  %v72_v61 = vadd.f32 %v70_v57, %v58_v52  ;;  %v135_v1 = vsel %vm123_vm0, %v134_v60, 0.0 }
  0x38   :  { %v124_v62 = vsel %vm123_vm0, %v122_v59, 0.0  ;;  %v73_v63 = vmul.f32 0.5, %v71_v58 }
  0x39   :  { %125 = vadd.xlane.f32.xlu0 %v124_v62  ;;  %v74_v0 = vmul.f32 0.5, %v72_v61 }
  0x3a   :  { %v75_v3 = vsub.f32 0.0, %v73_v63 }
  0x3b   :  { %v76_v2 = vsub.f32 0.0, %v74_v0 }
  0x3d   :  { %136 = vadd.xlane.f32.xlu0 %v135_v1  ;;  %v110_v4 = vadd.f32 %v76_v2, %v75_v3 }
  0x3f   :  { %v111_v5 = vrot.slane %v110_v4, 4 }
  0x41   :  { %v112_v6 = vadd.f32 %v111_v5, %v110_v4 }
  0x43   :  { %v113_v7 = vrot.slane %v112_v6, 2 }
  0x45   :  { %v114_v8 = vadd.f32 %v113_v7, %v112_v6 }
  0x47   :  { %v115_v9 = vrot.slane %v114_v8, 1 }
  0x49   :  { %v116_v11 = vadd.f32 %v115_v9, %v114_v8 }
  0x4b   :  { %v117_v12 = vadd.f32 %v116_v11, %v109_v10 }
  0x4d   :  { %118 = vst [vmem:[#allocation2 + $0x3] sm:$0x1] %v117_v12 }
  0x54   :  { %v164_v13 = vld [vmem:[#allocation2 + $0x3] sm:$0x1] }
  0x55   :  { %v165_v14 = vsel %vm123_vm0, %v164_v13, 0.0 }
  0x56   :  { %166 = vadd.xlane.f32.xlu1 %v165_v14 }
  0xbf   :  { %v148_v15 = vpop.xlane.xlu1 %147 }
  0xc0   :  { %v149_v16 = vrot.slane %v148_v15, 4 }
  0xc2   :  { %v150_v17 = vadd.f32 %v149_v16, %v148_v15  ;;  %v126_v18 = vpop.xlane.xlu0 %125 }
  0xc3   :  { %v127_v19 = vrot.slane %v126_v18, 4 }
  0xc4   :  { %v151_v21 = vrot.slane %v150_v17, 2 }
  0xc5   :  { %v128_v20 = vadd.f32 %v127_v19, %v126_v18 }
  0xc6   :  { %v137_v22 = vpop.xlane.xlu0 %136  ;;  %v152_v27 = vadd.f32 %v151_v21, %v150_v17 }
  0xc7   :  { %v129_v23 = vrot.slane %v128_v20, 2  ;;  %v138_v24 = vrot.slane %v137_v22, 4 }
  0xc8   :  { %v153_v32 = vrot.slane %v152_v27, 1 }
  0xc9   :  { %v139_v25 = vadd.f32 %v138_v24, %v137_v22  ;;  %v130_v26 = vadd.f32 %v129_v23, %v128_v20 }
  0xca   :  { %v154_v35 = vadd.f32 %v153_v32, %v152_v27 }
  0xcb   :  { %v140_v28 = vrot.slane %v139_v25, 2  ;;  %v131_v29 = vrot.slane %v130_v26, 1 }
  0xcd   :  { %v141_v30 = vadd.f32 %v140_v28, %v139_v25  ;;  %v132_v31 = vadd.f32 %v131_v29, %v130_v26 }
  0xcf   :  { %200 = vpush %v132_v31  ;;  %v142_v33 = vrot.slane %v141_v30, 1 }
  0xd1   :  { %v143_v34 = vadd.f32 %v142_v33, %v141_v30 }
  0xd3   :  { %202 = vpush %v143_v34 }
  0xd4   :  { %204 = vpush %v154_v35 }
  0xdf   :  { %v167_v36 = vpop.xlane.xlu1 %166 }
  0xe0   :  { %v168_v37 = vrot.slane %v167_v36, 4 }
  0xe2   :  { %v169_v38 = vadd.f32 %v168_v37, %v167_v36 }
  0xe4   :  { %v170_v40 = vrot.slane %v169_v38, 2 }
  0xe6   :  { %v171_v41 = vadd.f32 %v170_v40, %v169_v38 }
  0xe8   :  { %v172_v42 = vrot.slane %v171_v41, 1 }
  0xea   :  { %v173_v44 = vadd.f32 %v172_v42, %v171_v41 }
 0x100   :  { %s201_s0 = spop %200 }
 0x101   :  { %s158_s24 = smul.f32 2.0, %s201_s0 }
 0x103   :  { %s159_s25 = sadd.f32 1.0, %s158_s24 }
 0x104   :  { %s203_s1 = spop %202 }
 0x105   :  { %s205_s21 = spop %204 }
 0x106   :  { %s156_s22 = sadd.f32 %s205_s21, %s203_s1 }
 0x108   :  { %s157_s23 = sadd.f32 1.0, %s156_s22 }
 0x10a   :  { %v160_v39 = vstv %s157_s23 }
 0x10b   :  { %224 = vrcp.f32 %v160_v39 }
 0x118   :  { %v225_v43 = vpop.eup %224 }
 0x119   :  { %206 = vpush %v225_v43 }
 0x11a   :  { %208 = vpush %v173_v44 }
 0x14a   :  { %s207_s26 = spop %206 }
 0x14b   :  { %s163_s27 = smul.f32 %s207_s26, %s159_s25  ;;  %s209_s28 = spop %208 }
 0x14c   :  { %s177_s29 = smul.f32 0.00048828125, %s209_s28 }
 0x14d   :  { %s179_s30 = smul.f32 0.5, %s163_s27 }
 0x14e   :  { %s178_s3 = smul.f32 0.5, %s177_s29 }
 0x150   :  { %s180_s6 = ssub.f32 %s178_s3, %s179_s30 }
 0x152   :  { %v181_v45 = vstv %s180_s6 }
 0x153   :  { %183 = vst.msk [vmem:[#allocation8] sm:$0x1] %vm182_vm1, %v181_v45 }
 0x154   :  { %277 = shalt.err (!%p274_p0)
}
 0x155   :  { %193 = dma.vmem_to_hbm [thread:$0]  %s191_s5, 16, %s328_s2, [#allocation5]  }
 0x156   :  { %290 = dma.done.wait [#allocation5], 16  }
 0x157   :  { %291 = vsyncadd [#allocation5], 4294967280 }
 0x158   :  { %197 = vsyncpa [#allocation4], 1 }
 0x159   :  { %198 = vsyncpa [#allocation7], 1 }
 0x15a   :  { %199 = vsyncpa [#allocation5], 1 }

</bundles_post_ra>
